<compile_context>
chip_gen: v7x
topology: tpu7x:2x2x1
jax: 0.10.0
libtpu: 0.0.40
codegen_flags: <defaults>
</compile_context>

<pallas_src>
import functools

import jax
import jax.numpy as jnp
from jax import lax
from jax.experimental import pallas as pl
from jax.experimental.pallas import tpu as pltpu


def _round_up(x, m):
    return ((x + m - 1) // m) * m


def _qnet_kernel(x_ref, w1_ref, b1_ref, w2_ref, b2_ref, w3_ref, b3_ref, o_ref,
                 *, chunk, compute_dtype, epilogue_dtype):
    """One batch tile.

    x_ref: (TB, in) f32 -- cast to bf16 in-kernel.
    w*_ref: [in, out] bf16 (pre-transposed).  b1/b2: (1, 64) epilogue dtype.
    b3: (1, out) f32.  o_ref: (TB, out) f32.
    The tile is processed in row sub-chunks so h1/h2 stay small instead of
    materializing full (TB, 64) temporaries between the three matmuls.
    """

    def run_rows(r0, rows):
        x = x_ref[pl.ds(r0, rows), :].astype(compute_dtype)          # f32 load, VPU cast
        h = jnp.dot(x, w1_ref[...], preferred_element_type=jnp.float32)
        h = jnp.maximum(h.astype(epilogue_dtype) + b1_ref[...], 0.0).astype(compute_dtype)
        h = jnp.dot(h, w2_ref[...], preferred_element_type=jnp.float32)
        h = jnp.maximum(h.astype(epilogue_dtype) + b2_ref[...], 0.0).astype(compute_dtype)
        out = jnp.dot(h, w3_ref[...], preferred_element_type=jnp.float32) + b3_ref[...]
        o_ref[pl.ds(r0, rows), :] = out.astype(o_ref.dtype)

    tb = x_ref.shape[0]
    if tb <= chunk or tb % chunk != 0:
        run_rows(0, tb)
    else:
        n_chunks = tb // chunk

        def body(c, carry):
            run_rows(pl.multiple_of(c * chunk, chunk), chunk)
            return carry

        lax.fori_loop(0, n_chunks, body, 0)


def _pick_epilogue_dtype():
    """bf16 epilogue on v6e/v7x (bf16 VPU); f32 on v5e / unknown chips."""
    try:
        kind = jax.devices()[0].device_kind.lower()
    except Exception:
        return jnp.float32
    if "v6" in kind or "v7" in kind:
        return jnp.bfloat16
    return jnp.float32


def prepare_params(params, compute_dtype=jnp.bfloat16, epilogue_dtype=None):
    """One-time conversion of PyTorch-convention params (w:[out,in], b:[out])
    into kernel-ready arrays: bf16 [in,out] weights and (1,out) biases."""
    if epilogue_dtype is None:
        epilogue_dtype = _pick_epilogue_dtype()
    return {
        "w1": params["w1"].T.astype(compute_dtype),            # [in, 64]
        "w2": params["w2"].T.astype(compute_dtype),            # [64, 64]
        "w3": params["w3"].T.astype(compute_dtype),            # [64, out]
        "b1": params["b1"].reshape(1, -1).astype(epilogue_dtype),
        "b2": params["b2"].reshape(1, -1).astype(epilogue_dtype),
        "b3": params["b3"].reshape(1, -1).astype(jnp.float32),  # output stays f32
    }


def qnetwork_forward(x, prepared, *, tb_max=8192, inner_chunk=512):
    """x: [B, input_size] float32.  prepared: output of prepare_params()."""
    B, in_size = x.shape
    w1, w2, w3 = prepared["w1"], prepared["w2"], prepared["w3"]
    b1, b2, b3 = prepared["b1"], prepared["b2"], prepared["b3"]
    hidden = w1.shape[1]
    out_size = w3.shape[1]
    compute_dtype = w1.dtype
    epilogue_dtype = b1.dtype

    # Tile selection:
    #  * tiny batches -> one full-array block (no (8,128) constraint, no pad)
    #  * otherwise >= 2 grid steps (both v7x TensorCores get work), tiles are
    #    multiples of 256 and capped at tb_max.  VMEM cost is ~2 KB/row of
    #    double-buffered blocks, so tb_max=8192 is ~17 MiB -- well under the
    #    48 MiB limit below even on v7x's 64 MiB VMEM.
    if B <= 256:
        tb = B
        b_pad = B
    else:
        tb = min(tb_max, _round_up(-(-B // 2), 256))
        b_pad = _round_up(B, tb)

    x_in = x
    if b_pad != B:
        # Ragged-batch path only; padded rows produce garbage Q-values that are
        # sliced off below -- never read the padded region.  For deployment,
        # prefer a batch size that divides tb_max to skip this copy entirely.
        x_in = jnp.pad(x, ((0, b_pad - B), (0, 0)))

    kernel = functools.partial(
        _qnet_kernel, chunk=inner_chunk,
        compute_dtype=compute_dtype, epilogue_dtype=epilogue_dtype)

    flops = 2 * b_pad * (in_size * hidden + hidden * hidden + hidden * out_size)
    bytes_accessed = (b_pad * in_size * 4 + b_pad * out_size * 4
                      + (w1.size + w2.size + w3.size) * 2
                      + (b1.size + b2.size + b3.size) * 4)

    out = pl.pallas_call(
        kernel,
        out_shape=jax.ShapeDtypeStruct((b_pad, out_size), jnp.float32),
        grid=(b_pad // tb,),
        in_specs=[
            pl.BlockSpec((tb, in_size), lambda i: (i, 0)),   # x streams per tile
            pl.BlockSpec(w1.shape, lambda i: (0, 0)),        # params stay resident
            pl.BlockSpec(b1.shape, lambda i: (0, 0)),
            pl.BlockSpec(w2.shape, lambda i: (0, 0)),
            pl.BlockSpec(b2.shape, lambda i: (0, 0)),
            pl.BlockSpec(w3.shape, lambda i: (0, 0)),
            pl.BlockSpec(b3.shape, lambda i: (0, 0)),
        ],
        out_specs=pl.BlockSpec((tb, out_size), lambda i: (i, 0)),
        compiler_params=pltpu.CompilerParams(
            dimension_semantics=("parallel",),
            vmem_limit_bytes=48 * 1024 * 1024),
        cost_estimate=pl.CostEstimate(
            flops=flops, transcendentals=0, bytes_accessed=bytes_accessed),
    )(x_in, w1, b1, w2, b2, w3, b3)

    return out[:B] if b_pad != B else out


def init_params(key, input_size, output_size, hidden=64):
    # PyTorch-style uniform init bounds (1/sqrt(fan_in)), PyTorch layout.
    ks = jax.random.split(key, 6)

    def lin(kw, kb, fan_in, fan_out):
        bound = 1.0 / jnp.sqrt(fan_in)
        w = jax.random.uniform(kw, (fan_out, fan_in), jnp.float32, -bound, bound)
        b = jax.random.uniform(kb, (fan_out,), jnp.float32, -bound, bound)
        return w, b

    w1, b1 = lin(ks[0], ks[1], input_size, hidden)
    w2, b2 = lin(ks[2], ks[3], hidden, hidden)
    w3, b3 = lin(ks[4], ks[5], hidden, output_size)
    return {"w1": w1, "b1": b1, "w2": w2, "b2": b2, "w3": w3, "b3": b3}


if __name__ == "__main__":
    key = jax.random.PRNGKey(0)
    k_x, k_p, k_x2 = jax.random.split(key, 3)

    batch, input_size, output_size = 8, 16, 4
    x = jax.random.normal(k_x, (batch, input_size), jnp.float32)
    params = init_params(k_p, input_size, output_size)
    prepared = prepare_params(params)

    out = jax.block_until_ready(qnetwork_forward(x, prepared))

    # Pure-JAX f32 reference of the same forward pass (PyTorch semantics).
    def ref(x, p):
        h = jnp.maximum(x @ p["w1"].T + p["b1"], 0.0)
        h = jnp.maximum(h @ p["w2"].T + p["b2"], 0.0)
        return h @ p["w3"].T + p["b3"]

    expected = ref(x, params)
    assert out.shape == (batch, output_size)
    # bf16 inputs/weights + f32 accumulation -> loose-ish tolerance vs f32 ref.
    assert jnp.allclose(out, expected, atol=3e-2, rtol=3e-2), float(
        jnp.max(jnp.abs(out - expected)))

    # Exercise the multi-tile (grid=2, megacore), inner-chunk-loop and
    # ragged-batch-padding paths.
    batch2 = 3000
    x2 = jax.random.normal(k_x2, (batch2, input_size), jnp.float32)
    out2 = jax.block_until_ready(qnetwork_forward(x2, prepared))
    expected2 = ref(x2, params)
    assert out2.shape == (batch2, output_size)
    assert jnp.allclose(out2, expected2, atol=3e-2, rtol=3e-2), float(
        jnp.max(jnp.abs(out2 - expected2)))

    print("KERNEL_OK")
</pallas_src>

<mosaic_0001>
module attributes {stable_mosaic.version = 11 : i64} {
  func.func @_qnet_kernel(%arg0: i32, %arg1: memref<8x16xf32, #tpu.memory_space<vmem>>, %arg2: memref<16x64xbf16, #tpu.memory_space<vmem>>, %arg3: memref<1x64xf32, #tpu.memory_space<vmem>>, %arg4: memref<64x64xbf16, #tpu.memory_space<vmem>>, %arg5: memref<1x64xf32, #tpu.memory_space<vmem>>, %arg6: memref<64x4xbf16, #tpu.memory_space<vmem>>, %arg7: memref<1x4xf32, #tpu.memory_space<vmem>>, %arg8: memref<8x4xf32, #tpu.memory_space<vmem>>) attributes {dimension_semantics = [#tpu.dimension_semantics<parallel>], iteration_bounds = array<i64: 1>, scalar_prefetch = 0 : i64, scratch_operands = 0 : i64, tpu.core_type = #tpu.core_type<tc>, window_params = [{transform_indices = @transform_0, window_bounds = array<i64: 8, 16>}, {pipeline_mode = #tpu.pipeline_mode<synchronous>, transform_indices = @transform_1, window_bounds = array<i64: 16, 64>}, {pipeline_mode = #tpu.pipeline_mode<synchronous>, transform_indices = @transform_2, window_bounds = array<i64: 1, 64>}, {pipeline_mode = #tpu.pipeline_mode<synchronous>, transform_indices = @transform_3, window_bounds = array<i64: 64, 64>}, {pipeline_mode = #tpu.pipeline_mode<synchronous>, transform_indices = @transform_4, window_bounds = array<i64: 1, 64>}, {pipeline_mode = #tpu.pipeline_mode<synchronous>, transform_indices = @transform_5, window_bounds = array<i64: 64, 4>}, {pipeline_mode = #tpu.pipeline_mode<synchronous>, transform_indices = @transform_6, window_bounds = array<i64: 1, 4>}, {transform_indices = @transform_7, window_bounds = array<i64: 8, 4>}]} {
    %c0 = arith.constant 0 : index
    %c0_0 = arith.constant 0 : index
    %0 = vector.load %arg1[%c0, %c0_0] : memref<8x16xf32, #tpu.memory_space<vmem>>, vector<8x16xf32>
    %1 = arith.truncf %0 : vector<8x16xf32> to vector<8x16xbf16>
    %c0_1 = arith.constant 0 : index
    %c0_2 = arith.constant 0 : index
    %2 = vector.load %arg2[%c0_1, %c0_2] : memref<16x64xbf16, #tpu.memory_space<vmem>>, vector<16x64xbf16>
    %cst = arith.constant dense<0.000000e+00> : vector<8x64xf32>
    %3 = tpu.matmul %1, %2, %cst {dimension_numbers = #tpu.dot_dimension_numbers<[1], [0], [0], [1], [0, 0, 1, 1], [], []>} : vector<8x16xbf16>, vector<16x64xbf16>, vector<8x64xf32> -> vector<8x64xf32>
    %c0_3 = arith.constant 0 : index
    %c0_4 = arith.constant 0 : index
    %4 = vector.load %arg3[%c0_3, %c0_4] : memref<1x64xf32, #tpu.memory_space<vmem>>, vector<1x64xf32>
    %5 = vector.broadcast %4 : vector<1x64xf32> to vector<8x64xf32>
    %6 = arith.addf %3, %5 : vector<8x64xf32>
    %cst_5 = arith.constant 0.000000e+00 : f32
    %7 = vector.broadcast %cst_5 : f32 to vector<8x64xf32>
    %8 = arith.maximumf %6, %7 : vector<8x64xf32>
    %9 = arith.truncf %8 : vector<8x64xf32> to vector<8x64xbf16>
    %c0_6 = arith.constant 0 : index
    %c0_7 = arith.constant 0 : index
    %10 = vector.load %arg4[%c0_6, %c0_7] : memref<64x64xbf16, #tpu.memory_space<vmem>>, vector<64x64xbf16>
    %cst_8 = arith.constant dense<0.000000e+00> : vector<8x64xf32>
    %11 = tpu.matmul %9, %10, %cst_8 {dimension_numbers = #tpu.dot_dimension_numbers<[1], [0], [0], [1], [0, 0, 1, 1], [], []>} : vector<8x64xbf16>, vector<64x64xbf16>, vector<8x64xf32> -> vector<8x64xf32>
    %c0_9 = arith.constant 0 : index
    %c0_10 = arith.constant 0 : index
    %12 = vector.load %arg5[%c0_9, %c0_10] : memref<1x64xf32, #tpu.memory_space<vmem>>, vector<1x64xf32>
    %13 = vector.broadcast %12 : vector<1x64xf32> to vector<8x64xf32>
    %14 = arith.addf %11, %13 : vector<8x64xf32>
    %cst_11 = arith.constant 0.000000e+00 : f32
    %15 = vector.broadcast %cst_11 : f32 to vector<8x64xf32>
    %16 = arith.maximumf %14, %15 : vector<8x64xf32>
    %17 = arith.truncf %16 : vector<8x64xf32> to vector<8x64xbf16>
    %c0_12 = arith.constant 0 : index
    %c0_13 = arith.constant 0 : index
    %18 = vector.load %arg6[%c0_12, %c0_13] : memref<64x4xbf16, #tpu.memory_space<vmem>>, vector<64x4xbf16>
    %cst_14 = arith.constant dense<0.000000e+00> : vector<8x4xf32>
    %19 = tpu.matmul %17, %18, %cst_14 {dimension_numbers = #tpu.dot_dimension_numbers<[1], [0], [0], [1], [0, 0, 1, 1], [], []>} : vector<8x64xbf16>, vector<64x4xbf16>, vector<8x4xf32> -> vector<8x4xf32>
    %c0_15 = arith.constant 0 : index
    %c0_16 = arith.constant 0 : index
    %20 = vector.load %arg7[%c0_15, %c0_16] : memref<1x4xf32, #tpu.memory_space<vmem>>, vector<1x4xf32>
    %21 = vector.broadcast %20 : vector<1x4xf32> to vector<8x4xf32>
    %22 = arith.addf %19, %21 : vector<8x4xf32>
    %c0_17 = arith.constant 0 : index
    %c0_18 = arith.constant 0 : index
    %23 = vector.load %arg8[%c0_17, %c0_18] : memref<8x4xf32, #tpu.memory_space<vmem>>, vector<8x4xf32>
    tpu.vector_store %arg8[%c0_17, %c0_18], %22 {strides = array<i32>} : memref<8x4xf32, #tpu.memory_space<vmem>>, vector<8x4xf32>,
    return
  }
  func.func @transform_0(%arg0: i32) -> (i32, i32) {
    %c0_i32 = arith.constant 0 : i32
    %c0_i32_0 = arith.constant 0 : i32
    return %arg0, %c0_i32 : i32, i32
  }
  func.func @transform_1(%arg0: i32) -> (i32, i32) {
    %c0_i32 = arith.constant 0 : i32
    %c0_i32_0 = arith.constant 0 : i32
    %c0_i32_1 = arith.constant 0 : i32
    return %c0_i32, %c0_i32_0 : i32, i32
  }
  func.func @transform_2(%arg0: i32) -> (i32, i32) {
    %c0_i32 = arith.constant 0 : i32
    %c0_i32_0 = arith.constant 0 : i32
    %c0_i32_1 = arith.constant 0 : i32
    return %c0_i32, %c0_i32_0 : i32, i32
  }
  func.func @transform_3(%arg0: i32) -> (i32, i32) {
    %c0_i32 = arith.constant 0 : i32
    %c0_i32_0 = arith.constant 0 : i32
    %c0_i32_1 = arith.constant 0 : i32
    return %c0_i32, %c0_i32_0 : i32, i32
  }
  func.func @transform_4(%arg0: i32) -> (i32, i32) {
    %c0_i32 = arith.constant 0 : i32
    %c0_i32_0 = arith.constant 0 : i32
    %c0_i32_1 = arith.constant 0 : i32
    return %c0_i32, %c0_i32_0 : i32, i32
  }
  func.func @transform_5(%arg0: i32) -> (i32, i32) {
    %c0_i32 = arith.constant 0 : i32
    %c0_i32_0 = arith.constant 0 : i32
    %c0_i32_1 = arith.constant 0 : i32
    return %c0_i32, %c0_i32_0 : i32, i32
  }
  func.func @transform_6(%arg0: i32) -> (i32, i32) {
    %c0_i32 = arith.constant 0 : i32
    %c0_i32_0 = arith.constant 0 : i32
    %c0_i32_1 = arith.constant 0 : i32
    return %c0_i32, %c0_i32_0 : i32, i32
  }
  func.func @transform_7(%arg0: i32) -> (i32, i32) {
    %c0_i32 = arith.constant 0 : i32
    %c0_i32_0 = arith.constant 0 : i32
    return %arg0, %c0_i32 : i32, i32
  }
}

</mosaic_0001>

<bundles_post_ra>
// kernel: tpu_custom_call.1
= control target key start
LH: loop header
LB: loop body
LE: loop exit
PB: predicated region body
PF: predicated region fallthrough
CT: control target
= control target key end

     0   :  { %12 = vsyncpa [#allocation3], 0  ;;  %s373_s24 = smov [#allocation2]   ;;  %s471_s0 = inlined_call_operand.vmem [shape: f32[8,16], index: 0, kind: input, shape index: {}]   ;;  %s472_s1 = inlined_call_operand.hbm [shape: bf16[16,64], index: 1, kind: input, shape index: {}]   ;;  %s473_s2 = inlined_call_operand.vmem [shape: f32[1,64], index: 2, kind: input, shape index: {}]   ;;  %s474_s3 = inlined_call_operand.vmem [shape: bf16[64,64], index: 3, kind: input, shape index: {}]   ;;  %s475_s4 = inlined_call_operand.vmem [shape: f32[1,64], index: 4, kind: input, shape index: {}]   ;;  %s476_s5 = inlined_call_operand.vmem [shape: bf16[64,4], index: 5, kind: input, shape index: {}]   ;;  %s477_s6 = inlined_call_operand.vmem [shape: f32[1,4], index: 6, kind: input, shape index: {}]   ;;  %s478_s7 = inlined_call_operand.vmem [shape: f32[8,4], index: 7, kind: output, shape index: {}]  }
   0x1   :  { %s20_s25 = sshll.u32 %s373_s24, 4  ;;  %s349_s28 = scalar_lea.hbm %s472_s1, 128  ;;  %s21_s25 = int_to_ptr.vmem [resolvable:$true] %s20_s25 }
   0x2   :  { %p350_p0 = scmp.ne.s32.totalorder %s472_s1, %s349_s28  ;;  %p353_p1 = scmp.lt.u32.totalorder %s349_s28, %s472_s1 }
   0x4   :  { %p355_p2 = pnand %p353_p1, %p350_p0 }
   0x6   :  { %358 = shalt.err (!%p355_p2)
}
   0x7   :  { %s359_s10 = scalar_lea.vmem %s21_s25, 128  ;;  %p364_p4 = scmp.lt.s32.totalorder %s21_s25, %s21_s25 }
   0x8   :  { %p360_p3 = scmp.ne.s32.totalorder %s21_s25, %s359_s10  ;;  %p365_p5 = scmp.lt.s32.totalorder %s359_s10, %s359_s10 }
   0xa   :  { %p366_p6 = por %p365_p5, %p364_p4 }
   0xc   :  { %p367_p7 = pnand %p366_p6, %p360_p3 }
   0xe   :  { %370 = shalt.err (!%p367_p7)
}
   0xf   :  { %s374_s11 = smov 64   ;;  %s375_s12 = smov 4  }
  0x10   :  { %26 = dma.hbm_to_vmem [thread:$0]  %s472_s1, 128, %s21_s25, [#allocation3], %s374_s11, %s374_s11, %s375_s12  }
  0x11   :  { %371 = dma.done.wait [#allocation3], 128  }
  0x12   :  { %372 = vsyncadd [#allocation3], 4294967168  ;;  %v376_v0 = vmov 0.0   ;;  %vm377_vm0 = vmmov 0   ;;  %v340_v1 = vld [vmem:[#allocation2] sm:$0xff]   ;;  %vm58_vm1 = vcmask 130048  }
  0x13   :  { %305 = vmatprep.subr.bf16.mxu0 %v376_v0  ;;  %307 = vmatprep.mubr.msk.bf16.mxu0 %vm377_vm0, %v376_v0  ;;  %v41_v2 = vld [vmem:[%s471_s0] sm:$0xff]  ;;  %v342_v5 = vld [vmem:[%s474_s3 + $0x8] sm:$0xff]   ;;  %v343_v6 = vld [vmem:[%s474_s3 + $0x10] sm:$0xff]   ;;  %vm143_vm2 = vcmask 523264   ;;  %vm271_vm3 = vcmask 31744  }
  0x14   :  { %311 = vmatprep.subr.bf16.mxu1 %v376_v0  ;;  %319 = vmatprep.mubr.msk.bf16.mxu1 %vm377_vm0, %v376_v0  ;;  %v42_v3 = vpack.c.bf16 %v41_v2, %v41_v2  ;;  %v341_v4 = vld [vmem:[%s474_s3] sm:$0xff]   ;;  %v344_v7 = vld [vmem:[%s474_s3 + $0x18] sm:$0xff]   ;;  %v346_v9 = vld [vmem:[%s476_s5 + $0x8] sm:$0xff]  }
  0x15   :  { %306 = vmatpush3.bf16.msra.mxu0 %v340_v1  ;;  %312 = vmatpush3.bf16.msra.mxu1 %v341_v4  ;;  %v345_v8 = vld [vmem:[%s476_s5] sm:$0xff]   ;;  %v347_v18 = vld [vmem:[%s476_s5 + $0x10] sm:$0xff]   ;;  %v348_v19 = vld [vmem:[%s476_s5 + $0x18] sm:$0xff]  }
  0x16   :  { %323 = vmatprep.subr.bf16.mxu0 %v376_v0  ;;  %313 = vmatprep.subr.bf16.mxu1 %v376_v0  ;;  %v278_v10 = vld [vmem:[%s473_s2] ss:$0 sm:$0xff] }
  0x17   :  { %v281_v20 = vld [vmem:[%s475_s4] ss:$0 sm:$0xff] }
  0x18   :  { %308 = vmatmul.mubr.msk.bf16.vlgmr.msra.gmra.mrb[0].mxu0 %vm58_vm1, %v42_v3  ;;  %v287_v28 = vld [vmem:[%s477_s6] ss:$0 sm:$0xff] }
  0x19   :  { %331 = vmatprep.mubr.msk.bf16.mxu0 %vm377_vm0, %v376_v0  ;;  %314 = vmatpush3.bf16.msra.mxu1 %v342_v5 }
  0x1a   :  { %315 = vmatprep.subr.bf16.mxu1 %v376_v0  ;;  %324 = vmatpush3.bf16.msra.mxu0 %v345_v8 }
  0x1b   :  { %325 = vmatprep.subr.bf16.mxu0 %v376_v0 }
  0x1d   :  { %316 = vmatpush3.bf16.msra.mxu1 %v343_v6 }
  0x1e   :  { %317 = vmatprep.subr.bf16.mxu1 %v376_v0  ;;  %326 = vmatpush3.bf16.msra.mxu0 %v346_v9 }
  0x1f   :  { %327 = vmatprep.subr.bf16.mxu0 %v376_v0 }
  0x21   :  { %318 = vmatpush3.bf16.msra.mxu1 %v344_v7 }
  0x22   :  { %328 = vmatpush3.bf16.msra.mxu0 %v347_v18 }
  0x23   :  { %329 = vmatprep.subr.bf16.mxu0 %v376_v0 }
  0x26   :  { %330 = vmatpush3.bf16.msra.mxu0 %v348_v19 }
  0xeb   :  { %v96_v11 = vpop.f32.mrb[0].mxu0 }
  0xec   :  { %v97_v12 = vadd.f32 %v278_v10, %v96_v11  ;;  %v309_v13 = vpop.f32.mrb[1].mxu0 }
  0xed   :  { %v99_v14 = vpop.f32.mrb[2].mxu0 }
  0xee   :  { %v102_v15 = vmax.f32 %v97_v12, 0.0  ;;  %v310_v16 = vpop.f32.mrb[3].mxu0 }
  0xf0   :  { %v103_v17 = vpack.c.bf16 %v102_v15, %v102_v15 }
  0xf2   :  { %320 = vmatmul.mubr.msk.bf16.vlgmr.msra.gmra.mrb[0].mxu1 %vm143_vm2, %v103_v17 }
 0x1c5   :  { %v181_v21 = vpop.f32.mrb[0].mxu1 }
 0x1c6   :  { %v182_v22 = vadd.f32 %v281_v20, %v181_v21  ;;  %v321_v23 = vpop.f32.mrb[1].mxu1 }
 0x1c7   :  { %v184_v24 = vpop.f32.mrb[2].mxu1 }
 0x1c8   :  { %v187_v25 = vmax.f32 %v182_v22, 0.0  ;;  %v322_v26 = vpop.f32.mrb[3].mxu1 }
 0x1ca   :  { %v188_v27 = vpack.c.bf16 %v187_v25, %v187_v25 }
 0x1cc   :  { %332 = vmatmul.mubr.msk.bf16.vlgmr.msra.gmra.mrb[4].mxu0 %vm143_vm2, %v188_v27 }
 0x29f   :  { %v265_v29 = vpop.f32.mrb[4].mxu0 }
 0x2a0   :  { %v266_v30 = vadd.f32 %v287_v28, %v265_v29  ;;  %v333_v31 = vpop.f32.mrb[5].mxu0 }
 0x2a1   :  { %v268_v32 = vpop.f32.mrb[6].mxu0 }
 0x2a2   :  { %272 = vst.msk [vmem:[%s478_s7] sm:$0xff] %vm271_vm3, %v266_v30  ;;  %v334_v33 = vpop.f32.mrb[7].mxu0 }
 0x2a3   :  { %277 = vsyncpa [#allocation3], 1 }

</bundles_post_ra>
